<compile_context>
chip_gen: v6e
topology: v6e:2x2x1
jax: 0.10.0
libtpu: 0.0.40
codegen_flags: <defaults>
</compile_context>

<pallas_src>
import functools

import jax
import jax.numpy as jnp
from jax.experimental import pallas as pl
from jax.experimental.pallas import tpu as pltpu


def _sage_conv_kernel(a_ref, x_ref, invdeg_ref, wl_ref, wr_ref, b_ref,
                      o_ref, acc_ref, *, apply_relu, tm, tk):
    """One SAGEConv layer for one row tile.

    Grid = (row_tiles, contraction_tiles).  acc accumulates the exact neighbor
    feature sums (counts @ X, width = f_in = the narrow side); the f32 1/deg mean
    scale, the two small linears (lin_l on the aggregate, lin_r on the root
    features), bias and the optional ReLU run once at the last contraction step.
    """
    i = pl.program_id(0)
    k = pl.program_id(1)

    @pl.when(k == 0)
    def _init():
        acc_ref[...] = jnp.zeros_like(acc_ref)

    # int8 edge counts -> bf16 right before the MXU (HBM/VMEM stream stays 1 B/elem).
    a_tile = a_ref[...].astype(jnp.bfloat16)                           # [tm, tk]
    x_nb = x_ref[pl.ds(pl.multiple_of(k * tk, tk), tk), :]             # [tk, f_in]
    acc_ref[...] += jnp.dot(a_tile, x_nb, preferred_element_type=jnp.float32)

    @pl.when(k == pl.num_programs(1) - 1)
    def _finalize():
        # Mean aggregation: exact integer neighbor sums scaled by f32 1/deg.
        agg = (acc_ref[...] * invdeg_ref[...]).astype(jnp.bfloat16)    # [tm, f_in]
        x_self = x_ref[pl.ds(pl.multiple_of(i * tm, tm), tm), :]       # [tm, f_in]
        out = (jnp.dot(agg, wl_ref[...], preferred_element_type=jnp.float32)
               + jnp.dot(x_self, wr_ref[...], preferred_element_type=jnp.float32)
               + b_ref[...])
        if apply_relu:
            out = jnp.maximum(out, 0.0)
        # Dropout: module evaluated in inference mode -> identity.
        # TODO(synk): add stochastic dropout via pltpu.prng_* if training mode is needed.
        o_ref[...] = out.astype(o_ref.dtype)


def _sage_conv(a_i8, x_bf16, invdeg, w_l, w_r, b, *, apply_relu, out_dtype, tm, tk):
    """Tiled pallas_call for one SAGEConv layer on the (padded) int8 count matrix."""
    n_pad = a_i8.shape[0]
    f_in = x_bf16.shape[1]
    f_out = w_l.shape[1]
    assert n_pad % tm == 0 and n_pad % tk == 0
    grid = (n_pad // tm, n_pad // tk)

    kernel = functools.partial(_sage_conv_kernel, apply_relu=apply_relu, tm=tm, tk=tk)

    flops = 2 * n_pad * n_pad * f_in + 2 * 2 * n_pad * f_in * f_out
    bytes_accessed = (a_i8.size                                   # int8 adjacency (dominant)
                      + x_bf16.size * 2 + n_pad * 4
                      + 2 * f_in * f_out * 2 + f_out * 4
                      + n_pad * f_out * jnp.dtype(out_dtype).itemsize)

    # VMEM estimate (x2 headroom, floor at the default 32 MiB, cap well under v7x's
    # 64 MiB): double-buffered int8 A tile, its bf16 cast temp, the resident bf16
    # feature matrix (double-buffered alloc, DMA'd once), f32 accumulator + output.
    vmem_est = (2 * tm * tk + 2 * tm * tk + 2 * n_pad * f_in * 2
                + tm * f_in * 4 + 2 * tm * f_out * 4)
    vmem_limit = int(min(max(2 * vmem_est, 32 * 1024 * 1024), 48 * 1024 * 1024))

    return pl.pallas_call(
        kernel,
        out_shape=jax.ShapeDtypeStruct((n_pad, f_out), out_dtype),
        grid_spec=pltpu.PrefetchScalarGridSpec(
            num_scalar_prefetch=0,
            grid=grid,
            in_specs=[
                pl.BlockSpec((tm, tk), lambda i, k: (i, k)),          # int8 edge counts
                pl.BlockSpec((n_pad, f_in), lambda i, k: (0, 0)),     # X / h1, VMEM-resident
                pl.BlockSpec((tm, 1), lambda i, k: (i, 0)),           # f32 1/deg per row
                pl.BlockSpec((f_in, f_out), lambda i, k: (0, 0)),     # W_l (neighbors)
                pl.BlockSpec((f_in, f_out), lambda i, k: (0, 0)),     # W_r (root)
                pl.BlockSpec((1, f_out), lambda i, k: (0, 0)),        # bias
            ],
            out_specs=pl.BlockSpec((tm, f_out), lambda i, k: (i, 0)),
            scratch_shapes=[pltpu.VMEM((tm, f_in), jnp.float32)],
        ),
        compiler_params=pltpu.CompilerParams(
            dimension_semantics=("parallel", "arbitrary"),
            vmem_limit_bytes=vmem_limit),
        cost_estimate=pl.CostEstimate(flops=flops, transcendentals=0,
                                      bytes_accessed=bytes_accessed),
    )(a_i8, x_bf16, invdeg, w_l, w_r, b)


def _choose_tiles(n_pad):
    """Per-generation-safe tile sizes.

    tm: 256 (128 for tiny graphs) so there are always >= 2 row tiles -> the
    "parallel" row axis can split across v7x's two TensorCores.
    tk: whole row panel when it fits, else the largest divisor <= 4096 so the
    double-buffered int8 A tile plus its bf16 cast temp stays a few MiB even
    within v7x's 64 MiB VMEM (v5e/v6e have more headroom; sweepable).
    """
    tm = 128 if n_pad <= 512 else 256
    if n_pad <= 4096:
        tk = n_pad
    else:
        tk = 256
        for cand in (4096, 2048, 1024, 512):
            if n_pad % cand == 0:
                tk = cand
                break
    return tm, tk


def sage_forward(x, edge_counts, inv_deg, w1_l, w1_r, b1, w2_l, w2_r, b2):
    """Full SAGE forward: two tiled SAGEConv pallas_calls."""
    n, f_in = x.shape
    hidden = w1_l.shape[1]
    num_classes = w2_l.shape[1]

    # Pad the node dim to a multiple of 256 so every tile choice divides evenly.
    # Zero A rows/cols and zero feature rows contribute nothing to real outputs.
    n_pad = max(256, ((n + 255) // 256) * 256)
    tm, tk = _choose_tiles(n_pad)

    # Exact int8 edge counts (half the HBM bytes of bf16); mean scale stays f32.
    # TODO(synk): counts > 127 (heavily duplicated edge lists) would need a wider dtype.
    a_p = jnp.zeros((n_pad, n_pad), jnp.int8).at[:n, :n].set(
        jnp.clip(edge_counts, 0, 127).astype(jnp.int8))
    x_p = jnp.zeros((n_pad, f_in), jnp.bfloat16).at[:n, :].set(x.astype(jnp.bfloat16))
    invd_p = jnp.zeros((n_pad, 1), jnp.float32).at[:n, :].set(inv_deg)

    # bf16 weights for full-rate MXU in the finalize linears; biases stay f32.
    w1_l_b = w1_l.astype(jnp.bfloat16)
    w1_r_b = w1_r.astype(jnp.bfloat16)
    b1_f = b1.astype(jnp.float32)

    # Lane-dense final store: pad the class dim to a multiple of 128 with zero
    # weight columns / zero bias, slice the real classes back out at the end.
    c_pad = ((num_classes + 127) // 128) * 128
    w2_l_p = jnp.zeros((hidden, c_pad), jnp.bfloat16).at[:, :num_classes].set(
        w2_l.astype(jnp.bfloat16))
    w2_r_p = jnp.zeros((hidden, c_pad), jnp.bfloat16).at[:, :num_classes].set(
        w2_r.astype(jnp.bfloat16))
    b2_p = jnp.zeros((1, c_pad), jnp.float32).at[:, :num_classes].set(b2)

    # Layer 1.  NOTE: padded rows of h1 come out as relu(b1), not 0; harmless because
    # the corresponding A columns are zero and the padding is sliced off at the end.
    h1 = _sage_conv(a_p, x_p, invd_p, w1_l_b, w1_r_b, b1_f,
                    apply_relu=True, out_dtype=jnp.bfloat16, tm=tm, tk=tk)
    # Layer 2: aggregate over hidden=32 (still narrow), padded linear, lane-dense store.
    out_pad = _sage_conv(a_p, h1, invd_p, w2_l_p, w2_r_p, b2_p,
                         apply_relu=False, out_dtype=jnp.float32, tm=tm, tk=tk)
    return out_pad[:n, :num_classes]


def build_graph_operands(edge_index, num_nodes):
    """Dense edge-count matrix (row=target, col=source; PyG source_to_target flow)
    plus f32 1/in-degree.  Duplicate edges accumulate; zero in-degree rows -> 0."""
    src, dst = edge_index[0], edge_index[1]
    counts = jnp.zeros((num_nodes, num_nodes), jnp.float32).at[dst, src].add(1.0)
    deg = jnp.sum(counts, axis=1, keepdims=True)
    inv_deg = jnp.where(deg > 0, 1.0 / deg, 0.0)
    return counts, inv_deg


if __name__ == "__main__":
    key = jax.random.PRNGKey(0)
    k_x, k_e, k_w1l, k_w1r, k_b1, k_w2l, k_w2r, k_b2 = jax.random.split(key, 8)

    # Small synthetic shapes implied by the module.
    num_nodes = 256
    input_dim = 16
    hidden_dim = 32
    num_classes = 4
    num_edges = 1024

    x = jax.random.normal(k_x, (num_nodes, input_dim), jnp.float32)
    edge_index = jax.random.randint(k_e, (2, num_edges), 0, num_nodes, jnp.int32)
    edge_counts, inv_deg = build_graph_operands(edge_index, num_nodes)

    # SAGEConv parameters: lin_l (applied to the neighbor mean, has bias) and
    # lin_r (applied to the root features, no bias).  Stored as [in, out] so the
    # kernel computes h @ W (== PyTorch h @ W^T).
    w1_l = 0.1 * jax.random.normal(k_w1l, (input_dim, hidden_dim), jnp.float32)
    w1_r = 0.1 * jax.random.normal(k_w1r, (input_dim, hidden_dim), jnp.float32)
    b1 = 0.1 * jax.random.normal(k_b1, (1, hidden_dim), jnp.float32)
    w2_l = 0.1 * jax.random.normal(k_w2l, (hidden_dim, num_classes), jnp.float32)
    w2_r = 0.1 * jax.random.normal(k_w2r, (hidden_dim, num_classes), jnp.float32)
    b2 = 0.1 * jax.random.normal(k_b2, (1, num_classes), jnp.float32)

    out = sage_forward(x, edge_counts, inv_deg,
                       w1_l, w1_r, b1, w2_l, w2_r, b2)
    jax.block_until_ready(out)

    # Pure-f32 JAX reference of the same forward (kernel streams bf16 -> loose tol).
    a_mean = edge_counts * inv_deg
    ref_h1 = jnp.maximum((a_mean @ x) @ w1_l + b1 + x @ w1_r, 0.0)
    ref_out = (a_mean @ ref_h1) @ w2_l + b2 + ref_h1 @ w2_r
    max_err = float(jnp.max(jnp.abs(out - ref_out)))
    assert jnp.allclose(out, ref_out, atol=5e-2, rtol=5e-2), max_err

    print("KERNEL_OK")
</pallas_src>

<mosaic_0001>
module attributes {stable_mosaic.version = 11 : i64} {
  func.func @_sage_conv_kernel(%arg0: i32, %arg1: i32, %arg2: memref<128x256xi8, #tpu.memory_space<vmem>>, %arg3: memref<256x16xbf16, #tpu.memory_space<vmem>>, %arg4: memref<128x1xf32, #tpu.memory_space<vmem>>, %arg5: memref<16x32xbf16, #tpu.memory_space<vmem>>, %arg6: memref<16x32xbf16, #tpu.memory_space<vmem>>, %arg7: memref<1x32xf32, #tpu.memory_space<vmem>>, %arg8: memref<128x32xbf16, #tpu.memory_space<vmem>>, %arg9: memref<128x16xf32, #tpu.memory_space<vmem>>) attributes {dimension_semantics = [#tpu.dimension_semantics<parallel>, #tpu.dimension_semantics<arbitrary>], iteration_bounds = array<i64: 2, 1>, scalar_prefetch = 0 : i64, scratch_operands = 1 : i64, tpu.core_type = #tpu.core_type<tc>, window_params = [{transform_indices = @transform_0, window_bounds = array<i64: 128, 256>}, {pipeline_mode = #tpu.pipeline_mode<synchronous>, transform_indices = @transform_1, window_bounds = array<i64: 256, 16>}, {transform_indices = @transform_2, window_bounds = array<i64: 128, 1>}, {pipeline_mode = #tpu.pipeline_mode<synchronous>, transform_indices = @transform_3, window_bounds = array<i64: 16, 32>}, {pipeline_mode = #tpu.pipeline_mode<synchronous>, transform_indices = @transform_4, window_bounds = array<i64: 16, 32>}, {pipeline_mode = #tpu.pipeline_mode<synchronous>, transform_indices = @transform_5, window_bounds = array<i64: 1, 32>}, {transform_indices = @transform_6, window_bounds = array<i64: 128, 32>}]} {
    %c0_i32 = arith.constant 0 : i32
    %0 = arith.cmpi eq, %arg1, %c0_i32 : i32
    %1 = arith.extui %0 : i1 to i32
    %c0_i32_0 = arith.constant 0 : i32
    %2 = arith.cmpi ne, %1, %c0_i32_0 : i32
    scf.if %2 {
      %cst_9 = arith.constant 0.000000e+00 : f32
      %16 = vector.broadcast %cst_9 : f32 to vector<128x16xf32>
      %c0_10 = arith.constant 0 : index
      %c0_11 = arith.constant 0 : index
      %17 = vector.load %arg9[%c0_10, %c0_11] : memref<128x16xf32, #tpu.memory_space<vmem>>, vector<128x16xf32>
      tpu.vector_store %arg9[%c0_10, %c0_11], %16 {strides = array<i32>} : memref<128x16xf32, #tpu.memory_space<vmem>>, vector<128x16xf32>,
    } else {
    }
    %c0 = arith.constant 0 : index
    %c0_1 = arith.constant 0 : index
    %3 = vector.load %arg2[%c0, %c0_1] : memref<128x256xi8, #tpu.memory_space<vmem>>, vector<128x256xi8>
    %4 = arith.sitofp %3 : vector<128x256xi8> to vector<128x256xbf16>
    %c256_i32 = arith.constant 256 : i32
    %5 = arith.muli %arg1, %c256_i32 : i32
    %6 = tpu.assume_multiple %5, 256 : i32
    %7 = arith.index_cast %6 : i32 to index
    %c0_2 = arith.constant 0 : index
    %8 = vector.load %arg3[%7, %c0_2] : memref<256x16xbf16, #tpu.memory_space<vmem>>, vector<256x16xbf16>
    %c0_3 = arith.constant 0 : index
    %c0_4 = arith.constant 0 : index
    %9 = vector.load %arg9[%c0_3, %c0_4] : memref<128x16xf32, #tpu.memory_space<vmem>>, vector<128x16xf32>
    %cst = arith.constant dense<0.000000e+00> : vector<128x16xf32>
    %10 = tpu.matmul %4, %8, %cst {dimension_numbers = #tpu.dot_dimension_numbers<[1], [0], [0], [1], [0, 0, 1, 1], [], []>} : vector<128x256xbf16>, vector<256x16xbf16>, vector<128x16xf32> -> vector<128x16xf32>
    %11 = arith.addf %9, %10 : vector<128x16xf32>
    %c0_5 = arith.constant 0 : index
    %c0_6 = arith.constant 0 : index
    %12 = vector.load %arg9[%c0_5, %c0_6] : memref<128x16xf32, #tpu.memory_space<vmem>>, vector<128x16xf32>
    tpu.vector_store %arg9[%c0_5, %c0_6], %11 {strides = array<i32>} : memref<128x16xf32, #tpu.memory_space<vmem>>, vector<128x16xf32>,
    %c0_i32_7 = arith.constant 0 : i32
    %13 = arith.cmpi eq, %arg1, %c0_i32_7 : i32
    %14 = arith.extui %13 : i1 to i32
    %c0_i32_8 = arith.constant 0 : i32
    %15 = arith.cmpi ne, %14, %c0_i32_8 : i32
    scf.if %15 {
      %c0_9 = arith.constant 0 : index
      %c0_10 = arith.constant 0 : index
      %16 = vector.load %arg9[%c0_9, %c0_10] : memref<128x16xf32, #tpu.memory_space<vmem>>, vector<128x16xf32>
      %c0_11 = arith.constant 0 : index
      %c0_12 = arith.constant 0 : index
      %17 = vector.load %arg4[%c0_11, %c0_12] : memref<128x1xf32, #tpu.memory_space<vmem>>, vector<128x1xf32>
      %18 = vector.broadcast %17 : vector<128x1xf32> to vector<128x16xf32>
      %19 = arith.mulf %16, %18 : vector<128x16xf32>
      %20 = arith.truncf %19 : vector<128x16xf32> to vector<128x16xbf16>
      %c128_i32 = arith.constant 128 : i32
      %21 = arith.muli %arg0, %c128_i32 : i32
      %22 = tpu.assume_multiple %21, 128 : i32
      %23 = arith.index_cast %22 : i32 to index
      %c0_13 = arith.constant 0 : index
      %24 = vector.load %arg3[%23, %c0_13] : memref<256x16xbf16, #tpu.memory_space<vmem>>, vector<128x16xbf16>
      %c0_14 = arith.constant 0 : index
      %c0_15 = arith.constant 0 : index
      %25 = vector.load %arg5[%c0_14, %c0_15] : memref<16x32xbf16, #tpu.memory_space<vmem>>, vector<16x32xbf16>
      %cst_16 = arith.constant dense<0.000000e+00> : vector<128x32xf32>
      %26 = tpu.matmul %20, %25, %cst_16 {dimension_numbers = #tpu.dot_dimension_numbers<[1], [0], [0], [1], [0, 0, 1, 1], [], []>} : vector<128x16xbf16>, vector<16x32xbf16>, vector<128x32xf32> -> vector<128x32xf32>
      %c0_17 = arith.constant 0 : index
      %c0_18 = arith.constant 0 : index
      %27 = vector.load %arg6[%c0_17, %c0_18] : memref<16x32xbf16, #tpu.memory_space<vmem>>, vector<16x32xbf16>
      %cst_19 = arith.constant dense<0.000000e+00> : vector<128x32xf32>
      %28 = tpu.matmul %24, %27, %cst_19 {dimension_numbers = #tpu.dot_dimension_numbers<[1], [0], [0], [1], [0, 0, 1, 1], [], []>} : vector<128x16xbf16>, vector<16x32xbf16>, vector<128x32xf32> -> vector<128x32xf32>
      %29 = arith.addf %26, %28 : vector<128x32xf32>
      %c0_20 = arith.constant 0 : index
      %c0_21 = arith.constant 0 : index
      %30 = vector.load %arg7[%c0_20, %c0_21] : memref<1x32xf32, #tpu.memory_space<vmem>>, vector<1x32xf32>
      %31 = vector.broadcast %30 : vector<1x32xf32> to vector<128x32xf32>
      %32 = arith.addf %29, %31 : vector<128x32xf32>
      %cst_22 = arith.constant 0.000000e+00 : f32
      %33 = vector.broadcast %cst_22 : f32 to vector<128x32xf32>
      %34 = arith.maximumf %32, %33 : vector<128x32xf32>
      %35 = arith.truncf %34 : vector<128x32xf32> to vector<128x32xbf16>
      %c0_23 = arith.constant 0 : index
      %c0_24 = arith.constant 0 : index
      %36 = vector.load %arg8[%c0_23, %c0_24] : memref<128x32xbf16, #tpu.memory_space<vmem>>, vector<128x32xbf16>
      tpu.vector_store %arg8[%c0_23, %c0_24], %35 {strides = array<i32>} : memref<128x32xbf16, #tpu.memory_space<vmem>>, vector<128x32xbf16>,
    } else {
    }
    return
  }
  func.func @transform_0(%arg0: i32, %arg1: i32) -> (i32, i32) {
    %c0_i32 = arith.constant 0 : i32
    return %arg0, %arg1 : i32, i32
  }
  func.func @transform_1(%arg0: i32, %arg1: i32) -> (i32, i32) {
    %c0_i32 = arith.constant 0 : i32
    %c0_i32_0 = arith.constant 0 : i32
    %c0_i32_1 = arith.constant 0 : i32
    return %c0_i32, %c0_i32_0 : i32, i32
  }
  func.func @transform_2(%arg0: i32, %arg1: i32) -> (i32, i32) {
    %c0_i32 = arith.constant 0 : i32
    %c0_i32_0 = arith.constant 0 : i32
    return %arg0, %c0_i32 : i32, i32
  }
  func.func @transform_3(%arg0: i32, %arg1: i32) -> (i32, i32) {
    %c0_i32 = arith.constant 0 : i32
    %c0_i32_0 = arith.constant 0 : i32
    %c0_i32_1 = arith.constant 0 : i32
    return %c0_i32, %c0_i32_0 : i32, i32
  }
  func.func @transform_4(%arg0: i32, %arg1: i32) -> (i32, i32) {
    %c0_i32 = arith.constant 0 : i32
    %c0_i32_0 = arith.constant 0 : i32
    %c0_i32_1 = arith.constant 0 : i32
    return %c0_i32, %c0_i32_0 : i32, i32
  }
  func.func @transform_5(%arg0: i32, %arg1: i32) -> (i32, i32) {
    %c0_i32 = arith.constant 0 : i32
    %c0_i32_0 = arith.constant 0 : i32
    %c0_i32_1 = arith.constant 0 : i32
    return %c0_i32, %c0_i32_0 : i32, i32
  }
  func.func @transform_6(%arg0: i32, %arg1: i32) -> (i32, i32) {
    %c0_i32 = arith.constant 0 : i32
    %c0_i32_0 = arith.constant 0 : i32
    return %arg0, %c0_i32 : i32, i32
  }
}

</mosaic_0001>

<bundles_post_ra>
// kernel: tpu_custom_call.1
= control target key start
LH: loop header
LB: loop body
LE: loop exit
PB: predicated region body
PF: predicated region fallthrough
CT: control target
= control target key end

     0   :  { %s1623_s21 = smov 0   ;;  %s1625_s22 = smov 0   ;;  %s1887_s0 = inlined_call_operand.vmem [shape: s8[256,256], index: 0, kind: input, shape index: {}]   ;;  %s1888_s1 = inlined_call_operand.vmem [shape: bf16[256,16], index: 1, kind: input, shape index: {}]   ;;  %s1889_s2 = inlined_call_operand.vmem [shape: f32[256,1], index: 2, kind: input, shape index: {}]   ;;  %s1890_s3 = inlined_call_operand.vmem [shape: bf16[16,32], index: 3, kind: input, shape index: {}]   ;;  %s1891_s4 = inlined_call_operand.vmem [shape: bf16[16,32], index: 4, kind: input, shape index: {}]   ;;  %s1892_s5 = inlined_call_operand.vmem [shape: f32[1,32], index: 5, kind: input, shape index: {}]   ;;  %s1893_s6 = inlined_call_operand.vmem [shape: bf16[256,32], index: 6, kind: output, shape index: {}]  }
   0x1   :  { %s1627_s23 = smov 0  }
   0x2 LB: > { %s28_s24 = sadd.s32 1, %s1580_s22  ;;  %p1302_p0 = scmp.ge.s32.totalorder %s1584_s23, 1  ;;  %s1584_s23 = sphi %s1627_s23, %s16_s23   ;;  %s1580_s22 = sphi %s1625_s22, %s1895_s22   ;;  %s1576_s21 = sphi %s1623_s21, %s1894_s21  }
   0x3   : > { %p30_p1 = scmp.ge.s32.totalorder %s28_s24, 2  ;;  %p244_p2 = scmp.lt.s32.totalorder %s1584_s23, 3 }
   0x5   : > { %s1897_s24 = smov (%p30_p1, %s28_s24), 0  ;;  %p245_p3 = pnand %p1302_p0, %p244_p2 }
   0x6   : > { %s1303_s27 = sshll.u32 (!%p245_p3), %s1576_s21, 2  ;;  %s1306_s12 = sshll.u32 (!%p245_p3), %s1576_s21, 4 }
   0x7   : > { %248 = sbr.rel (%p245_p3) target bundleno = 524 (0x20c), region = 44  ;;  %p286_p4 = scmp.lt.s32.totalorder (!%p245_p3), %s1303_s27, 7 }
   0x8   : > { %p297_p5 = scmp.lt.s32.totalorder (!%p245_p3), %s1306_s12, 31  ;;  %s1326_s7 = sshll.u32 (!%p245_p3), %s1576_s21, 7 }
   0x9   : > { %s773_s21 = sshra.s32 (!%p245_p3), %s1326_s7, 3 }
   0xc   : > { %v1536_v0 = vld [vmem:[%s1888_s1 + $0x78] sm:$0xff]   ;;  %v1538_v2 = vld [vmem:[%s1888_s1 + $0x70] sm:$0xff]   ;;  %v1586_v4 = vmov 0   ;;  %v1540_v5 = vld [vmem:[%s1888_s1 + $0x68] sm:$0xff]   ;;  %s1899_s27 = smov (!%p286_p4, %s1303_s27), 7  ;;  %s1901_s12 = smov (!%p297_p5, %s1306_s12), 31 }
   0xd   : > { %v1537_v1 = vld [vmem:[%s1888_s1 + $0x38] sm:$0xff]   ;;  %1390 = vmatprep.subr.bf16.mxu0 %v1536_v0  ;;  %v1539_v3 = vld [vmem:[%s1888_s1 + $0x30] sm:$0xff]   ;;  %1534 = vset.pattern.permute.xlu0 %v1586_v4  ;;  %v1541_v6 = vld [vmem:[%s1888_s1 + $0x28] sm:$0xff]   ;;  %s1373_s17 = sshll.u32 %s1899_s27, 4  ;;  %s1307_s26 = sshll.u32 %s1901_s12, 3  ;;  %vm313_vm0 = vcmask 130048  }
   0xe   : > { %1391 = vmatpush3.bf16.msra.mxu0 %v1537_v1  ;;  %1535 = vset.pattern.permute.xlu1 %v1586_v4  ;;  %v1542_v7 = vld [vmem:[%s1888_s1 + $0x60] sm:$0xff]   ;;  %v1544_v9 = vld [vmem:[%s1888_s1 + $0x58] sm:$0xff]   ;;  %s1678_s30 = scalar_lea.vmem %s1887_s0, %s1373_s17  ;;  %s1687_s11 = scalar_lea.vmem %s1889_s2, %s1307_s26  ;;  %v1546_v11 = vld [vmem:[%s1888_s1 + $0x50] sm:$0xff]   ;;  %v1587_v60 = vmov 0.0   ;;  %vm1194_vm1 = vcmask 257024  }
   0xf   : > { %1392 = vmatprep.subr.bf16.mxu0 %v1538_v2  ;;  %v1543_v8 = vld [vmem:[%s1888_s1 + $0x20] sm:$0xff]   ;;  %v1545_v10 = vld [vmem:[%s1888_s1 + $0x18] sm:$0xff]   ;;  %v331_v12 = vld [vmem:[%s1678_s30 + $0x8] sm:$0xff]  ;;  %s1327_s17 = sshll.u32 %s773_s21, 2  ;;  %314 = vst.msk [vmem:[#allocation2] sm:$0xff] %vm313_vm0, %v1587_v60  ;;  %s1309_s15 = sshll.u32 %s1901_s12, 2 }
  0x10   : > { %v339_v13 = vunpack.c.l.s8.bf16 %v331_v12  ;;  %v652_v14 = vld [vmem:[%s1687_s11] sm:$0xff]  ;;  %v1547_v15 = vld [vmem:[%s1888_s1 + $0x10] sm:$0xff]   ;;  %v1548_v17 = vld [vmem:[%s1888_s1 + $0x48] sm:$0xff]   ;;  %s1706_s26 = scalar_lea.vmem %s1888_s1, %s1327_s17  ;;  %v341_v32 = vunpack.c.h.s8.bf16 %v331_v12  ;;  %315 = vst.msk [vmem:[#allocation2 + $0x8] sm:$0xff] %vm313_vm0, %v1587_v60  ;;  %s1823_s18 = scalar_lea.vmem %s1893_s6, %s1309_s15 }
  0x11   : > { %v654_v16 = vld [vmem:[%s1687_s11 + $0x10] sm:$0xff]  ;;  %670 = vperm.xlu0 %1534, %v652_v14   ;;  %v653_v18 = vld [vmem:[%s1687_s11 + $0x8] sm:$0xff]  ;;  %v655_v19 = vld [vmem:[%s1687_s11 + $0x18] sm:$0xff]  ;;  %316 = vst.msk [vmem:[#allocation2 + $0x10] sm:$0xff] %vm313_vm0, %v1587_v60 }
  0x12   : > { %1393 = vmatpush3.bf16.msra.mxu0 %v1539_v3  ;;  %535 = vmatprep.mubr.bf16.mxu0 %v339_v13  ;;  %v1549_v20 = vld [vmem:[%s1888_s1 + $0x8] sm:$0xff]   ;;  %v1550_v21 = vld [vmem:[%s1888_s1 + $0x40] sm:$0xff]   ;;  %v658_v29 = vld [vmem:[%s1687_s11 + $0x30] sm:$0xff]  ;;  %317 = vst.msk [vmem:[#allocation2 + $0x18] sm:$0xff] %vm313_vm0, %v1587_v60 }
  0x13   : > { %1394 = vmatprep.subr.bf16.mxu0 %v1540_v5  ;;  %680 = vperm.xlu1 %1535, %v654_v16   ;;  %v656_v22 = vld [vmem:[%s1687_s11 + $0x20] sm:$0xff]  ;;  %v657_v23 = vld [vmem:[%s1687_s11 + $0x28] sm:$0xff]  ;;  %v659_v30 = vld [vmem:[%s1687_s11 + $0x38] sm:$0xff]  ;;  %318 = vst.msk [vmem:[#allocation2 + $0x20] sm:$0xff] %vm313_vm0, %v1587_v60 }
  0x14   : > { %v1552_v24 = vld [vmem:[%s1891_s4] sm:$0xff]   ;;  %v1554_v28 = vld [vmem:[%s1706_s26 + $0x8] sm:$0xff]   ;;  %v333_v35 = vld [vmem:[%s1678_s30 + $0x18] sm:$0xff]  ;;  %319 = vst.msk [vmem:[#allocation2 + $0x28] sm:$0xff] %vm313_vm0, %v1587_v60 }
  0x15   : > { %675 = vperm.xlu0 %1534, %v653_v18   ;;  %v1551_v25 = vld [vmem:[%s1888_s1] sm:$0xff]   ;;  %1472 = vmatprep.subr.bf16.mxu1 %v1552_v24  ;;  %v661_v34 = vld [vmem:[%s1687_s11 + $0x48] sm:$0xff]  ;;  %v662_v36 = vld [vmem:[%s1687_s11 + $0x50] sm:$0xff]  ;;  %v343_v39 = vunpack.c.l.s8.bf16 %v333_v35  ;;  %v345_v46 = vunpack.c.h.s8.bf16 %v333_v35  ;;  %320 = vst.msk [vmem:[#allocation2 + $0x30] sm:$0xff] %vm313_vm0, %v1587_v60 }
  0x16   : > { %1395 = vmatpush3.bf16.msra.mxu0 %v1541_v6  ;;  %v330_v26 = vld [vmem:[%s1678_s30] sm:$0xff]  ;;  %1473 = vmatpush3.bf16.msra.mxu1 %v1552_v24  ;;  %v663_v38 = vld [vmem:[%s1687_s11 + $0x58] sm:$0xff]  ;;  %v665_v41 = vld [vmem:[%s1687_s11 + $0x68] sm:$0xff]  ;;  %321 = vst.msk [vmem:[#allocation2 + $0x38] sm:$0xff] %vm313_vm0, %v1587_v60 }
  0x17   : > { %1396 = vmatprep.subr.bf16.mxu0 %v1542_v7  ;;  %685 = vperm.xlu1 %1535, %v655_v19   ;;  %v1553_v27 = vld [vmem:[%s1706_s26] sm:$0xff]   ;;  %v338_v31 = vunpack.c.l.s8.bf16 %v330_v26  ;;  %v340_v37 = vunpack.c.h.s8.bf16 %v330_v26  ;;  %v332_v42 = vld [vmem:[%s1678_s30 + $0x10] sm:$0xff]  ;;  %v667_v45 = vld [vmem:[%s1687_s11 + $0x78] sm:$0xff]  ;;  %322 = vst.msk [vmem:[#allocation2 + $0x40] sm:$0xff] %vm313_vm0, %v1587_v60 }
  0x18   : > { %1474 = vmatprep.mubr.msk.bf16.mxu1 %vm313_vm0, %v1553_v27  ;;  %v660_v33 = vld [vmem:[%s1687_s11 + $0x40] sm:$0xff]  ;;  %v666_v43 = vld [vmem:[%s1687_s11 + $0x70] sm:$0xff]  ;;  %v342_v44 = vunpack.c.l.s8.bf16 %v332_v42  ;;  %v335_v47 = vld [vmem:[%s1678_s30 + $0x28] sm:$0xff]  ;;  %v344_v48 = vunpack.c.h.s8.bf16 %v332_v42  ;;  %323 = vst.msk [vmem:[#allocation2 + $0x48] sm:$0xff] %vm313_vm0, %v1587_v60 }
  0x19   : > { %690 = vperm.xlu0 %1534, %v656_v22   ;;  %1475 = vmatmul.mubr.msk.bf16.vlgmr.msra.gmra.mxu1 %vm313_vm0, %v1554_v28  ;;  %v664_v40 = vld [vmem:[%s1687_s11 + $0x60] sm:$0xff]  ;;  %v347_v49 = vunpack.c.l.s8.bf16 %v335_v47  ;;  %v349_v52 = vunpack.c.h.s8.bf16 %v335_v47  ;;  %v337_v53 = vld [vmem:[%s1678_s30 + $0x38] sm:$0xff]  ;;  %v336_v56 = vld [vmem:[%s1678_s30 + $0x30] sm:$0xff]  ;;  %324 = vst.msk [vmem:[#allocation2 + $0x50] sm:$0xff] %vm313_vm0, %v1587_v60 }
  0x1a   : > { %1397 = vmatpush3.bf16.msra.mxu0 %v1543_v8  ;;  %v334_v50 = vld [vmem:[%s1678_s30 + $0x20] sm:$0xff]  ;;  %v351_v55 = vunpack.c.l.s8.bf16 %v337_v53  ;;  %v350_v57 = vunpack.c.l.s8.bf16 %v336_v56  ;;  %v353_v58 = vunpack.c.h.s8.bf16 %v337_v53  ;;  %v352_v59 = vunpack.c.h.s8.bf16 %v336_v56  ;;  %325 = vst.msk [vmem:[#allocation2 + $0x58] sm:$0xff] %vm313_vm0, %v1587_v60  ;;  %326 = vst.msk [vmem:[#allocation2 + $0x60] sm:$0xff] %vm313_vm0, %v1587_v60  ;;  %v1555_v61 = vld [vmem:[%s1706_s26 + $0x10] sm:$0xff]  }
  0x1b   : > { %1398 = vmatprep.subr.bf16.mxu0 %v1544_v9  ;;  %695 = vperm.xlu1 %1535, %v657_v23   ;;  %v346_v51 = vunpack.c.l.s8.bf16 %v334_v50  ;;  %v348_v54 = vunpack.c.h.s8.bf16 %v334_v50  ;;  %327 = vst.msk [vmem:[#allocation2 + $0x68] sm:$0xff] %vm313_vm0, %v1587_v60  ;;  %328 = vst.msk [vmem:[#allocation2 + $0x70] sm:$0xff] %vm313_vm0, %v1587_v60  ;;  %v1556_v62 = vld [vmem:[%s1706_s26 + $0x18] sm:$0xff]   ;;  %v1557_v63 = vld [vmem:[%s1706_s26 + $0x20] sm:$0xff]  }
  0x1c   : > { %329 = vst.msk [vmem:[#allocation2 + $0x78] sm:$0xff] %vm313_vm0, %v1587_v60  ;;  %1478 = vmatprep.mubr.msk.bf16.mxu1 %vm313_vm0, %v1555_v61  ;;  %v1558_v0 = vld [vmem:[%s1706_s26 + $0x28] sm:$0xff]   ;;  %v1559_v1 = vld [vmem:[%s1706_s26 + $0x30] sm:$0xff]   ;;  %v1560_v2 = vld [vmem:[%s1706_s26 + $0x38] sm:$0xff]  }
  0x1d   : > { %700 = vperm.xlu0 %1534, %v658_v29   ;;  %v1561_v3 = vld [vmem:[%s1890_s3] sm:$0xff]  }
  0x1e   : > { %1399 = vmatpush3.bf16.msra.mxu0 %v1545_v10  ;;  %1490 = vmatprep.subr.bf16.mxu1 %v1561_v3  ;;  %v391_v5 = vld [vmem:[#allocation2] sm:$0xff]  ;;  %v392_v10 = vld [vmem:[#allocation2 + $0x8] sm:$0xff] }
  0x1f   : > { %1400 = vmatprep.subr.bf16.mxu0 %v1546_v11  ;;  %705 = vperm.xlu1 %1535, %v659_v30   ;;  %v395_v29 = vld [vmem:[#allocation2 + $0x20] sm:$0xff] }
  0x20   : > { %1491 = vmatpush3.bf16.msra.mxu1 %v1561_v3 }
  0x21   : > { %710 = vperm.xlu0 %1534, %v660_v33   ;;  %1479 = vmatmul.mubr.msk.bf16.gmra.mxu1 %vm313_vm0, %v1556_v62 }
  0x22   : > { %1401 = vmatpush3.bf16.msra.mxu0 %v1547_v15  ;;  %1482 = vmatprep.mubr.msk.bf16.mxu1 %vm313_vm0, %v1557_v63  ;;  %v393_v15 = vld [vmem:[#allocation2 + $0x10] sm:$0xff]  ;;  %v399_v63 = vld [vmem:[#allocation2 + $0x40] sm:$0xff] }
  0x23   : > { %1402 = vmatprep.subr.bf16.mxu0 %v1548_v17  ;;  %715 = vperm.xlu1 %1535, %v661_v34  }
  0x25   : > { %720 = vperm.xlu0 %1534, %v662_v36  }
  0x26   : > { %1403 = vmatpush3.bf16.msra.mxu0 %v1549_v20 }
  0x27   : > { %1404 = vmatprep.subr.bf16.mxu0 %v1550_v21  ;;  %725 = vperm.xlu1 %1535, %v663_v38   ;;  %v394_v21 = vld [vmem:[#allocation2 + $0x18] sm:$0xff]  ;;  %v396_v38 = vld [vmem:[#allocation2 + $0x28] sm:$0xff] }
  0x29   : > { %730 = vperm.xlu0 %1534, %v664_v40   ;;  %1483 = vmatmul.mubr.msk.bf16.gmra.mxu1 %vm313_vm0, %v1558_v0 }
  0x2a   : > { %1405 = vmatpush3.bf16.msra.mxu0 %v1551_v25  ;;  %1486 = vmatprep.mubr.msk.bf16.mxu1 %vm313_vm0, %v1559_v1 }
  0x2b   : > { %735 = vperm.xlu1 %1535, %v665_v41  }
  0x2d   : > { %536 = vmatmul.mubr.bf16.vlgmr.msra.gmra.mxu0 %v338_v31  ;;  %740 = vperm.xlu0 %1534, %v666_v43  }
  0x2e   : > { %543 = vmatprep.mubr.bf16.mxu0 %v341_v32 }
  0x2f   : > { %745 = vperm.xlu1 %1535, %v667_v45  }
  0x31   : > { %1487 = vmatmul.mubr.msk.bf16.gmra.mxu1 %vm313_vm0, %v1560_v2 }
  0x35   : > { %544 = vmatmul.mubr.bf16.gmra.mxu0 %v340_v37 }
  0x36   : > { %551 = vmatprep.mubr.bf16.mxu0 %v343_v39 }
  0x3d   : > { %552 = vmatmul.mubr.bf16.gmra.mxu0 %v342_v44 }
  0x3e   : > { %559 = vmatprep.mubr.bf16.mxu0 %v345_v46  ;;  %v397_v46 = vld [vmem:[#allocation2 + $0x30] sm:$0xff] }
  0x45   : > { %560 = vmatmul.mubr.bf16.gmra.mxu0 %v344_v48 }
  0x46   : > { %567 = vmatprep.mubr.bf16.mxu0 %v347_v49 }
  0x4d   : > { %568 = vmatmul.mubr.bf16.gmra.mxu0 %v346_v51 }
  0x4e   : > { %575 = vmatprep.mubr.bf16.mxu0 %v349_v52 }
  0x55   : > { %576 = vmatmul.mubr.bf16.gmra.mxu0 %v348_v54  ;;  %v398_v54 = vld [vmem:[#allocation2 + $0x38] sm:$0xff] }
  0x56   : > { %583 = vmatprep.mubr.bf16.mxu0 %v351_v55 }
  0x5d   : > { %584 = vmatmul.mubr.bf16.gmra.mxu0 %v350_v57 }
  0x5e   : > { %591 = vmatprep.mubr.bf16.mxu0 %v353_v58 }
  0x65   : > { %592 = vmatmul.mubr.bf16.gmra.mxu0 %v352_v59 }
  0x8c   : > { %v671_v17 = vpop.permute.xlu0 %670 }
  0x8e   : > { %v681_v34 = vpop.permute.xlu1 %680 }
  0x90   : > { %v676_v26 = vpop.permute.xlu0 %675 }
  0x92   : > { %v686_v44 = vpop.permute.xlu1 %685 }
  0x94   : > { %v691_v59 = vpop.permute.xlu0 %690 }
  0x96   : > { %v696_v61 = vpop.permute.xlu1 %695 }
  0xed   : > { %v1406_v4 = vpop.f32.mrf.mxu0 }
  0xef   : > { %v1407_v6 = vpop.f32.mrf.mxu0 }
  0xf0   : > { %v1408_v7 = vadd.f32 %v1407_v6, %v1406_v4 }
  0xf1   : > { %v1409_v8 = vpop.f32.mrf.mxu0 }
  0xf2   : > { %v600_v9 = vadd.f32 %v1408_v7, %v391_v5  ;;  %v400_v7 = vld [vmem:[#allocation2 + $0x48] sm:$0xff] }
  0xf3   : > { %v1410_v11 = vpop.f32.mrf.mxu0 }
  0xf4   : > { %617 = vst.msk [vmem:[#allocation2] sm:$0xff] %vm313_vm0, %v600_v9  ;;  %v1411_v12 = vadd.f32 %v1410_v11, %v1409_v8 }
  0xf5   : > { %v1412_v13 = vpop.f32.mrf.mxu0 }
  0xf6   : > { %v601_v14 = vadd.f32 %v1411_v12, %v392_v10  ;;  %v701_v12 = vpop.permute.xlu0 %700 }
  0xf7   : > { %v1413_v16 = vpop.f32.mrf.mxu0 }
  0xf8   : > { %618 = vst.msk [vmem:[#allocation2 + $0x8] sm:$0xff] %vm313_vm0, %v601_v14  ;;  %v1414_v18 = vadd.f32 %v1413_v16, %v1412_v13  ;;  %v706_v14 = vpop.permute.xlu1 %705 }
  0xf9   : > { %v1415_v19 = vpop.f32.mrf.mxu0 }
  0xfa   : > { %v602_v20 = vadd.f32 %v1414_v18, %v393_v15  ;;  %v401_v15 = vld [vmem:[#allocation2 + $0x50] sm:$0xff] }
  0xfb   : > { %v1416_v22 = vpop.f32.mrf.mxu0  ;;  %v636_v24 = vld [vmem:[#allocation2] sm:$0xff] }
  0xfc   : > { %619 = vst.msk [vmem:[#allocation2 + $0x10] sm:$0xff] %vm313_vm0, %v602_v20  ;;  %v1417_v23 = vadd.f32 %v1416_v22, %v1415_v19  ;;  %v748_v31 = vmul.f32 %v671_v17, %v636_v24  ;;  %v402_v24 = vld [vmem:[#allocation2 + $0x58] sm:$0xff] }
  0xfd   : > { %v1418_v25 = vpop.f32.mrf.mxu0 }
  0xfe   : > { %v603_v27 = vadd.f32 %v1417_v23, %v394_v21 }
  0xff   : > { %v637_v28 = vld [vmem:[#allocation2 + $0x8] sm:$0xff]  ;;  %v1419_v30 = vpop.f32.mrf.mxu0 }
 0x100   : > { %620 = vst.msk [vmem:[#allocation2 + $0x18] sm:$0xff] %vm313_vm0, %v603_v27  ;;  %v749_v32 = vmul.f32 %v676_v26, %v637_v28  ;;  %v1420_v33 = vadd.f32 %v1419_v30, %v1418_v25 }
 0x101   : > { %v1421_v35 = vpop.f32.mrf.mxu0 }
 0x102   : > { %v764_v36 = vpack.c.bf16 %v749_v32, %v748_v31  ;;  %v604_v37 = vadd.f32 %v1420_v33, %v395_v29  ;;  %v711_v29 = vpop.permute.xlu0 %710  ;;  %v716_v31 = vpop.permute.xlu1 %715  ;;  %v403_v32 = vld [vmem:[#allocation2 + $0x60] sm:$0xff] }
 0x103   : > { %v1422_v39 = vpop.f32.mrf.mxu0  ;;  %v638_v41 = vld [vmem:[#allocation2 + $0x10] sm:$0xff] }
 0x104   : > { %621 = vst.msk [vmem:[#allocation2 + $0x20] sm:$0xff] %vm313_vm0, %v604_v37  ;;  %v1423_v40 = vadd.f32 %v1422_v39, %v1421_v35  ;;  %1492 = vmatprep.mubr.msk.bf16.mxu1 %vm313_vm0, %v764_v36  ;;  %v750_v48 = vmul.f32 %v681_v34, %v638_v41  ;;  %v404_v41 = vld [vmem:[#allocation2 + $0x68] sm:$0xff] }
 0x105   : > { %v1424_v42 = vpop.f32.mrf.mxu0 }
 0x106   : > { %v605_v43 = vadd.f32 %v1423_v40, %v396_v38 }
 0x107   : > { %v639_v45 = vld [vmem:[#allocation2 + $0x18] sm:$0xff]  ;;  %v1425_v47 = vpop.f32.mrf.mxu0 }
 0x108   : > { %v751_v49 = vmul.f32 %v686_v44, %v639_v45  ;;  %622 = vst.msk [vmem:[#allocation2 + $0x28] sm:$0xff] %vm313_vm0, %v605_v43  ;;  %v1426_v50 = vadd.f32 %v1425_v47, %v1424_v42 }
 0x109   : > { %v1427_v51 = vpop.f32.mrf.mxu0 }
 0x10a   : > { %v765_v52 = vpack.c.bf16 %v751_v49, %v750_v48  ;;  %v606_v53 = vadd.f32 %v1426_v50, %v397_v46  ;;  %v721_v46 = vpop.permute.xlu0 %720  ;;  %v726_v48 = vpop.permute.xlu1 %725  ;;  %v405_v49 = vld [vmem:[#allocation2 + $0x70] sm:$0xff] }
 0x10b   : > { %v1428_v55 = vpop.f32.mrf.mxu0  ;;  %v640_v57 = vld [vmem:[#allocation2 + $0x20] sm:$0xff] }
 0x10c   : > { %623 = vst.msk [vmem:[#allocation2 + $0x30] sm:$0xff] %vm313_vm0, %v606_v53  ;;  %v1429_v56 = vadd.f32 %v1428_v55, %v1427_v51  ;;  %1493 = vmatmul.mubr.msk.bf16.vlgmr.msra.gmra.mxu1 %vm313_vm0, %v765_v52  ;;  %v752_v1 = vmul.f32 %v691_v59, %v640_v57 }
 0x10d   : > { %v1430_v58 = vpop.f32.mrf.mxu0 }
 0x10e   : > { %v607_v60 = vadd.f32 %v1429_v56, %v398_v54 }
 0x10f   : > { %v641_v62 = vld [vmem:[#allocation2 + $0x28] sm:$0xff]  ;;  %v1431_v0 = vpop.f32.mrf.mxu0 }
 0x110   : > { %v753_v2 = vmul.f32 %v696_v61, %v641_v62  ;;  %624 = vst.msk [vmem:[#allocation2 + $0x38] sm:$0xff] %vm313_vm0, %v607_v60  ;;  %v1432_v3 = vadd.f32 %v1431_v0, %v1430_v58  ;;  %v406_v58 = vld [vmem:[#allocation2 + $0x78] sm:$0xff]  ;;  %v736_v0 = vpop.permute.xlu1 %735 }
 0x111   : > { %v1433_v4 = vpop.f32.mrf.mxu0 }
 0x112   : > { %v766_v5 = vpack.c.bf16 %v753_v2, %v752_v1  ;;  %v608_v6 = vadd.f32 %v1432_v3, %v399_v63  ;;  %v731_v63 = vpop.permute.xlu0 %730 }
 0x113   : > { %v1434_v8 = vpop.f32.mrf.mxu0  ;;  %v642_v10 = vld [vmem:[#allocation2 + $0x30] sm:$0xff] }
 0x114   : > { %625 = vst.msk [vmem:[#allocation2 + $0x40] sm:$0xff] %vm313_vm0, %v608_v6  ;;  %v1435_v9 = vadd.f32 %v1434_v8, %v1433_v4  ;;  %1496 = vmatprep.mubr.msk.bf16.mxu1 %vm313_vm0, %v766_v5  ;;  %v754_v18 = vmul.f32 %v701_v12, %v642_v10  ;;  %v1476_v12 = vpop.f32.mrf.mxu1 }
 0x115   : > { %v1436_v11 = vpop.f32.mrf.mxu0 }
 0x116   : > { %v609_v13 = vadd.f32 %v1435_v9, %v400_v7  ;;  %v741_v6 = vpop.permute.xlu0 %740  ;;  %v746_v7 = vpop.permute.xlu1 %745 }
 0x117   : > { %v1437_v16 = vpop.f32.mrf.mxu0  ;;  %v643_v17 = vld [vmem:[#allocation2 + $0x38] sm:$0xff] }
 0x118   : > { %626 = vst.msk [vmem:[#allocation2 + $0x48] sm:$0xff] %vm313_vm0, %v609_v13  ;;  %v1438_v19 = vadd.f32 %v1437_v16, %v1436_v11  ;;  %v755_v20 = vmul.f32 %v706_v14, %v643_v17  ;;  %v901_v13 = vpop.f32.mrf.mxu1 }
 0x119   : > { %v1439_v21 = vpop.f32.mrf.mxu0 }
 0x11a   : > { %v610_v22 = vadd.f32 %v1438_v19, %v401_v15  ;;  %v767_v23 = vpack.c.bf16 %v755_v20, %v754_v18  ;;  %v1477_v14 = vpop.f32.mrf.mxu1 }
 0x11b   : > { %v1440_v25 = vpop.f32.mrf.mxu0  ;;  %v644_v28 = vld [vmem:[#allocation2 + $0x40] sm:$0xff] }
 0x11c   : > { %627 = vst.msk [vmem:[#allocation2 + $0x50] sm:$0xff] %vm313_vm0, %v610_v22  ;;  %v1441_v26 = vadd.f32 %v1440_v25, %v1439_v21  ;;  %1497 = vmatmul.mubr.msk.bf16.gmra.mxu1 %vm313_vm0, %v767_v23  ;;  %v756_v36 = vmul.f32 %v711_v29, %v644_v28  ;;  %v904_v15 = vpop.f32.mrf.mxu1  ;;  %v1815_v29 = vld [vmem:[%s1892_s5] ss:$0 sm:$0xff] }
 0x11d   : > { %v1442_v27 = vpop.f32.mrf.mxu0 }
 0x11e   : > { %v611_v30 = vadd.f32 %v1441_v26, %v402_v24  ;;  %v1480_v16 = vpop.f32.mrf.mxu1 }
 0x11f   : > { %v1443_v33 = vpop.f32.mrf.mxu0  ;;  %v645_v34 = vld [vmem:[#allocation2 + $0x48] sm:$0xff] }
 0x120   : > { %628 = vst.msk [vmem:[#allocation2 + $0x58] sm:$0xff] %vm313_vm0, %v611_v30  ;;  %v1444_v35 = vadd.f32 %v1443_v33, %v1442_v27  ;;  %v757_v37 = vmul.f32 %v716_v31, %v645_v34  ;;  %v917_v17 = vpop.f32.mrf.mxu1 }
 0x121   : > { %v1445_v38 = vpop.f32.mrf.mxu0 }
 0x122   : > { %v612_v39 = vadd.f32 %v1444_v35, %v403_v32  ;;  %v768_v40 = vpack.c.bf16 %v757_v37, %v756_v36  ;;  %v1481_v18 = vpop.f32.mrf.mxu1 }
 0x123   : > { %v1446_v42 = vpop.f32.mrf.mxu0  ;;  %v646_v45 = vld [vmem:[#allocation2 + $0x50] sm:$0xff] }
 0x124   : > { %629 = vst.msk [vmem:[#allocation2 + $0x60] sm:$0xff] %vm313_vm0, %v612_v39  ;;  %v1447_v43 = vadd.f32 %v1446_v42, %v1445_v38  ;;  %1500 = vmatprep.mubr.msk.bf16.mxu1 %vm313_vm0, %v768_v40  ;;  %v758_v53 = vmul.f32 %v721_v46, %v646_v45  ;;  %v920_v19 = vpop.f32.mrf.mxu1 }
 0x125   : > { %v1448_v44 = vpop.f32.mrf.mxu0 }
 0x126   : > { %v613_v47 = vadd.f32 %v1447_v43, %v404_v41  ;;  %v1484_v20 = vpop.f32.mrf.mxu1 }
 0x127   : > { %v1449_v50 = vpop.f32.mrf.mxu0  ;;  %v647_v51 = vld [vmem:[#allocation2 + $0x58] sm:$0xff] }
 0x128   : > { %630 = vst.msk [vmem:[#allocation2 + $0x68] sm:$0xff] %vm313_vm0, %v613_v47  ;;  %v1450_v52 = vadd.f32 %v1449_v50, %v1448_v44  ;;  %v759_v54 = vmul.f32 %v726_v48, %v647_v51  ;;  %v1798_v21 = vpop.f32.mrf.mxu1 }
 0x129   : > { %v1451_v55 = vpop.f32.mrf.mxu0 }
 0x12a   : > { %v614_v56 = vadd.f32 %v1450_v52, %v405_v49  ;;  %v769_v57 = vpack.c.bf16 %v759_v54, %v758_v53  ;;  %v1800_v22 = vpop.f32.mrf.mxu1 }
 0x12b   : > { %v1452_v59 = vpop.f32.mrf.mxu0  ;;  %v648_v61 = vld [vmem:[#allocation2 + $0x60] sm:$0xff] }
 0x12c   : > { %631 = vst.msk [vmem:[#allocation2 + $0x70] sm:$0xff] %vm313_vm0, %v614_v56  ;;  %v1453_v60 = vadd.f32 %v1452_v59, %v1451_v55  ;;  %1501 = vmatmul.mubr.msk.bf16.gmra.mxu1 %vm313_vm0, %v769_v57  ;;  %v760_v2 = vmul.f32 %v731_v63, %v648_v61  ;;  %v1802_v23 = vpop.f32.mrf.mxu1 }
 0x12e   : > { %v615_v62 = vadd.f32 %v1453_v60, %v406_v58  ;;  %v1804_v24 = vpop.f32.mrf.mxu1 }
 0x12f   : > { %v649_v1 = vld [vmem:[#allocation2 + $0x68] sm:$0xff] }
 0x130   : > { %632 = vst.msk [vmem:[#allocation2 + $0x78] sm:$0xff] %vm313_vm0, %v615_v62  ;;  %v761_v3 = vmul.f32 %v736_v0, %v649_v1  ;;  %v1806_v25 = vpop.f32.mrf.mxu1 }
 0x132   : > { %v770_v4 = vpack.c.bf16 %v761_v3, %v760_v2  ;;  %v1808_v26 = vpop.f32.mrf.mxu1 }
 0x133   : > { %v650_v5 = vld [vmem:[#allocation2 + $0x70] sm:$0xff] }
 0x134   : > { %1504 = vmatprep.mubr.msk.bf16.mxu1 %vm313_vm0, %v770_v4  ;;  %v762_v9 = vmul.f32 %v741_v6, %v650_v5  ;;  %v1810_v27 = vpop.f32.mrf.mxu1 }
 0x137   : > { %v651_v8 = vld [vmem:[#allocation2 + $0x78] sm:$0xff] }
 0x138   : > { %v763_v10 = vmul.f32 %v746_v7, %v651_v8 }
 0x13a   : > { %v771_v11 = vpack.c.bf16 %v763_v10, %v762_v9 }
 0x13c   : > { %1505 = vmatmul.mubr.msk.bf16.gmra.mxu1 %vm313_vm0, %v771_v11 }
 0x1cc   : > { %v1494_v28 = vpop.f32.mrf.mxu1 }
 0x1cd   : > { %v1037_v30 = vadd.f32 %v1494_v28, %v1476_v12 }
 0x1ce   : > { %v1028_v31 = vpop.f32.mrf.mxu1 }
 0x1cf   : > { %v1100_v32 = vadd.f32 %v1815_v29, %v1037_v30  ;;  %v1029_v33 = vadd.f32 %v1028_v31, %v901_v13 }
 0x1d0   : > { %v1495_v34 = vpop.f32.mrf.mxu1 }
 0x1d1   : > { %v1116_v35 = vmax.f32 %v1100_v32, 0.0  ;;  %v1098_v36 = vadd.f32 %v1815_v29, %v1029_v33  ;;  %v1040_v37 = vadd.f32 %v1495_v34, %v1477_v14 }
 0x1d2   : > { %v1031_v38 = vpop.f32.mrf.mxu1 }
 0x1d3   : > { %v1376_v39 = vpack.c.bf16 %v1116_v35, %v1116_v35  ;;  %v1114_v40 = vmax.f32 %v1098_v36, 0.0  ;;  %v1101_v41 = vadd.f32 %v1815_v29, %v1040_v37  ;;  %v1032_v42 = vadd.f32 %v1031_v38, %v904_v15 }
 0x1d5   : > { %1197 = vst.msk [vmem:[%s1823_s18 + $0x8] sm:$0xf] %vm1194_vm1, %v1376_v39  ;;  %v1374_v43 = vpack.c.bf16 %v1114_v40, %v1114_v40  ;;  %v1117_v44 = vmax.f32 %v1101_v41, 0.0  ;;  %v1099_v45 = vadd.f32 %v1815_v29, %v1032_v42 }
 0x1d7   : > { %1195 = vst.msk [vmem:[%s1823_s18] sm:$0xf] %vm1194_vm1, %v1374_v43  ;;  %v1377_v46 = vpack.c.bf16 %v1117_v44, %v1117_v44  ;;  %v1115_v47 = vmax.f32 %v1099_v45, 0.0 }
 0x1d9   : > { %1198 = vst.msk [vmem:[%s1823_s18 + $0xc] sm:$0xf] %vm1194_vm1, %v1377_v46  ;;  %v1375_v48 = vpack.c.bf16 %v1115_v47, %v1115_v47 }
 0x1db   : > { %1196 = vst.msk [vmem:[%s1823_s18 + $0x4] sm:$0xf] %vm1194_vm1, %v1375_v48 }
 0x1dc   : > { %v1498_v49 = vpop.f32.mrf.mxu1 }
 0x1dd   : > { %v1053_v50 = vadd.f32 %v1498_v49, %v1480_v16 }
 0x1de   : > { %v1044_v51 = vpop.f32.mrf.mxu1 }
 0x1df   : > { %v1104_v52 = vadd.f32 %v1815_v29, %v1053_v50  ;;  %v1045_v53 = vadd.f32 %v1044_v51, %v917_v17 }
 0x1e0   : > { %v1499_v54 = vpop.f32.mrf.mxu1 }
 0x1e1   : > { %v1120_v55 = vmax.f32 %v1104_v52, 0.0  ;;  %v1102_v56 = vadd.f32 %v1815_v29, %v1045_v53  ;;  %v1056_v57 = vadd.f32 %v1499_v54, %v1481_v18 }
 0x1e2   : > { %v1047_v58 = vpop.f32.mrf.mxu1 }
 0x1e3   : > { %v1380_v59 = vpack.c.bf16 %v1120_v55, %v1120_v55  ;;  %v1118_v60 = vmax.f32 %v1102_v56, 0.0  ;;  %v1105_v61 = vadd.f32 %v1815_v29, %v1056_v57  ;;  %v1048_v62 = vadd.f32 %v1047_v58, %v920_v19 }
 0x1e5   : > { %1201 = vst.msk [vmem:[%s1823_s18 + $0x18] sm:$0xf] %vm1194_vm1, %v1380_v59  ;;  %v1378_v63 = vpack.c.bf16 %v1118_v60, %v1118_v60  ;;  %v1121_v0 = vmax.f32 %v1105_v61, 0.0  ;;  %v1103_v1 = vadd.f32 %v1815_v29, %v1048_v62 }
 0x1e7   : > { %1199 = vst.msk [vmem:[%s1823_s18 + $0x10] sm:$0xf] %vm1194_vm1, %v1378_v63  ;;  %v1381_v2 = vpack.c.bf16 %v1121_v0, %v1121_v0  ;;  %v1119_v3 = vmax.f32 %v1103_v1, 0.0 }
 0x1e9   : > { %1202 = vst.msk [vmem:[%s1823_s18 + $0x1c] sm:$0xf] %vm1194_vm1, %v1381_v2  ;;  %v1379_v4 = vpack.c.bf16 %v1119_v3, %v1119_v3 }
 0x1eb   : > { %1200 = vst.msk [vmem:[%s1823_s18 + $0x14] sm:$0xf] %vm1194_vm1, %v1379_v4 }
 0x1ec   : > { %v1502_v5 = vpop.f32.mrf.mxu1 }
 0x1ed   : > { %v1069_v6 = vadd.f32 %v1502_v5, %v1484_v20 }
 0x1ee   : > { %v1060_v7 = vpop.f32.mrf.mxu1 }
 0x1ef   : > { %v1108_v8 = vadd.f32 %v1815_v29, %v1069_v6  ;;  %v1061_v9 = vadd.f32 %v1060_v7, %v1798_v21 }
 0x1f0   : > { %v1503_v10 = vpop.f32.mrf.mxu1 }
 0x1f1   : > { %v1124_v11 = vmax.f32 %v1108_v8, 0.0  ;;  %v1106_v12 = vadd.f32 %v1815_v29, %v1061_v9  ;;  %v1072_v13 = vadd.f32 %v1503_v10, %v1800_v22 }
 0x1f2   : > { %v1063_v14 = vpop.f32.mrf.mxu1 }
 0x1f3   : > { %v1384_v15 = vpack.c.bf16 %v1124_v11, %v1124_v11  ;;  %v1122_v16 = vmax.f32 %v1106_v12, 0.0  ;;  %v1109_v17 = vadd.f32 %v1815_v29, %v1072_v13  ;;  %v1064_v18 = vadd.f32 %v1063_v14, %v1802_v23 }
 0x1f5   : > { %1205 = vst.msk [vmem:[%s1823_s18 + $0x28] sm:$0xf] %vm1194_vm1, %v1384_v15  ;;  %v1382_v19 = vpack.c.bf16 %v1122_v16, %v1122_v16  ;;  %v1125_v20 = vmax.f32 %v1109_v17, 0.0  ;;  %v1107_v21 = vadd.f32 %v1815_v29, %v1064_v18 }
 0x1f7   : > { %1203 = vst.msk [vmem:[%s1823_s18 + $0x20] sm:$0xf] %vm1194_vm1, %v1382_v19  ;;  %v1385_v28 = vpack.c.bf16 %v1125_v20, %v1125_v20  ;;  %v1123_v30 = vmax.f32 %v1107_v21, 0.0 }
 0x1f9   : > { %1206 = vst.msk [vmem:[%s1823_s18 + $0x2c] sm:$0xf] %vm1194_vm1, %v1385_v28  ;;  %v1383_v22 = vpack.c.bf16 %v1123_v30, %v1123_v30 }
 0x1fb   : > { %1204 = vst.msk [vmem:[%s1823_s18 + $0x24] sm:$0xf] %vm1194_vm1, %v1383_v22 }
 0x1fc   : > { %v1506_v31 = vpop.f32.mrf.mxu1 }
 0x1fd   : > { %v1085_v32 = vadd.f32 %v1506_v31, %v1804_v24 }
 0x1fe   : > { %v1076_v23 = vpop.f32.mrf.mxu1 }
 0x1ff   : > { %v1112_v33 = vadd.f32 %v1815_v29, %v1085_v32  ;;  %v1077_v34 = vadd.f32 %v1076_v23, %v1806_v25 }
 0x200   : > { %v1507_v35 = vpop.f32.mrf.mxu1 }
 0x201   : > { %v1128_v36 = vmax.f32 %v1112_v33, 0.0  ;;  %v1110_v37 = vadd.f32 %v1815_v29, %v1077_v34  ;;  %v1088_v38 = vadd.f32 %v1507_v35, %v1808_v26 }
 0x202   : > { %v1079_v39 = vpop.f32.mrf.mxu1 }
 0x203   : > { %v1388_v40 = vpack.c.bf16 %v1128_v36, %v1128_v36  ;;  %v1126_v41 = vmax.f32 %v1110_v37, 0.0  ;;  %v1113_v42 = vadd.f32 %v1815_v29, %v1088_v38  ;;  %v1080_v24 = vadd.f32 %v1079_v39, %v1810_v27 }
 0x205   : > { %1209 = vst.msk [vmem:[%s1823_s18 + $0x38] sm:$0xf] %vm1194_vm1, %v1388_v40  ;;  %v1386_v43 = vpack.c.bf16 %v1126_v41, %v1126_v41  ;;  %v1129_v44 = vmax.f32 %v1113_v42, 0.0  ;;  %v1111_v25 = vadd.f32 %v1815_v29, %v1080_v24 }
 0x207   : > { %1207 = vst.msk [vmem:[%s1823_s18 + $0x30] sm:$0xf] %vm1194_vm1, %v1386_v43  ;;  %v1389_v45 = vpack.c.bf16 %v1129_v44, %v1129_v44  ;;  %v1127_v46 = vmax.f32 %v1111_v25, 0.0 }
 0x209   : > { %1210 = vst.msk [vmem:[%s1823_s18 + $0x3c] sm:$0xf] %vm1194_vm1, %v1389_v45  ;;  %v1387_v26 = vpack.c.bf16 %v1127_v46, %v1127_v46 }
 0x20b   : > { %1208 = vst.msk [vmem:[%s1823_s18 + $0x34] sm:$0xf] %vm1194_vm1, %v1387_v26 }
 0x20c PF: > { %s16_s23 = sadd.s32 1, %s1584_s23   ;;  %s1894_s21 = smov %s1580_s22 }
 0x20d   : > { %p13_p6 = scmp.ge.s32.totalorder %s16_s23, 4   ;;  %s1895_s22 = smov %s1897_s24 }
 0x20f   :  { %15 = sbr.rel (!%p13_p6) target bundleno = 2 (0x2), region = 87 }

</bundles_post_ra>
